<compile_context>
chip_gen: v7x
topology: tpu7x:2x2x1
jax: 0.10.0
libtpu: 0.0.40
codegen_flags: <defaults>
</compile_context>

<pallas_src>
import jax
import jax.numpy as jnp
from jax.experimental import pallas as pl
from jax.experimental.pallas import tpu as pltpu

IN_DIM = 784
HID_DIM = 392
OUT_DIM = 10
OUT_PAD = 128          # lane-dense output block (slice back to 10 in wrapper)
MAX_BLOCK_B = 256      # batch tile: 256-aligned for v6e/v7x MXU, 2x128 for v5e


def _round_up(n, m):
    return ((n + m - 1) // m) * m


def mlp_kernel(x_ref, w1_ref, b1_ref, w2_ref, b2_ref, o_ref):
    # x/w1/w2 are bf16, biases f32. MXU matmuls accumulate in f32; the
    # bias-add + ReLU epilogue stays in f32 (no bf16 VPU dependency on v5e).
    x = x_ref[...]                                           # (TB, 784) bf16
    h = jnp.dot(x, w1_ref[...], preferred_element_type=jnp.float32)
    h = jnp.maximum(h + b1_ref[...], 0.0)                    # (TB, 392) f32
    y = jnp.dot(h.astype(jnp.bfloat16), w2_ref[...],
                preferred_element_type=jnp.float32)          # (TB, 128) f32
    o_ref[...] = (y + b2_ref[...]).astype(o_ref.dtype)


def digit_classifier_one_hidden(x, w1, b1, w2, b2, *, block_b=MAX_BLOCK_B):
    """x: (B, 784) f32. w1: (784, 392), b1: (392,), w2: (392, 10), b2: (10,)."""
    B = x.shape[0]

    # bf16 inputs / weights; f32 biases. Zero-pad w2/b2 to 128 output lanes
    # (zero bias on padded lanes keeps them exactly 0; sliced off below).
    x_bf = x.astype(jnp.bfloat16)
    w1_bf = w1.astype(jnp.bfloat16)
    w2_pad = jnp.zeros((HID_DIM, OUT_PAD), jnp.bfloat16)
    w2_pad = w2_pad.at[:, :OUT_DIM].set(w2.astype(jnp.bfloat16))
    b1_2d = b1.reshape(1, HID_DIM).astype(jnp.float32)
    b2_pad = jnp.zeros((1, OUT_PAD), jnp.float32)
    b2_pad = b2_pad.at[0, :OUT_DIM].set(b2.astype(jnp.float32))

    # Batch tile: multiple of 8 (sublane rule), capped at MAX_BLOCK_B.
    # Pad B up to a multiple of the tile so every grid step is full-size.
    tb = min(block_b, _round_up(max(B, 1), 8))
    b_pad = _round_up(B, tb)
    if b_pad != B:
        x_bf = jnp.pad(x_bf, ((0, b_pad - B), (0, 0)))

    grid = (b_pad // tb,)
    out = pl.pallas_call(
        mlp_kernel,
        out_shape=jax.ShapeDtypeStruct((b_pad, OUT_PAD), jnp.float32),
        grid=grid,
        in_specs=[
            # x: tiled over batch (double-buffered by the pipeline).
            pl.BlockSpec((tb, IN_DIM), lambda i: (i, 0)),
            # Weights/biases: constant block index -> loaded once, VMEM-resident.
            pl.BlockSpec((IN_DIM, HID_DIM), lambda i: (0, 0)),
            pl.BlockSpec((1, HID_DIM), lambda i: (0, 0)),
            pl.BlockSpec((HID_DIM, OUT_PAD), lambda i: (0, 0)),
            pl.BlockSpec((1, OUT_PAD), lambda i: (0, 0)),
        ],
        out_specs=pl.BlockSpec((tb, OUT_PAD), lambda i: (i, 0)),
        compiler_params=pltpu.CompilerParams(
            dimension_semantics=("parallel",)),   # shards tiles across TCs on v7x
    )(x_bf, w1_bf, b1_2d, w2_pad, b2_pad)

    return out[:B, :OUT_DIM]


def init_params(key):
    """Deterministic init mimicking torch.nn.Linear (uniform ±1/sqrt(fan_in))."""
    k1, k2, k3, k4 = jax.random.split(key, 4)
    bound1 = 1.0 / jnp.sqrt(IN_DIM)
    bound2 = 1.0 / jnp.sqrt(HID_DIM)
    # Stored already-transposed relative to PyTorch's (out, in) convention.
    w1 = jax.random.uniform(k1, (IN_DIM, HID_DIM), jnp.float32, -bound1, bound1)
    b1 = jax.random.uniform(k2, (HID_DIM,), jnp.float32, -bound1, bound1)
    w2 = jax.random.uniform(k3, (HID_DIM, OUT_DIM), jnp.float32, -bound2, bound2)
    b2 = jax.random.uniform(k4, (OUT_DIM,), jnp.float32, -bound2, bound2)
    return w1, b1, w2, b2


if __name__ == "__main__":
    key = jax.random.PRNGKey(0)
    k_x, k_p = jax.random.split(key)

    B = 2
    x = jax.random.normal(k_x, (B, IN_DIM), jnp.float32)
    w1, b1, w2, b2 = init_params(k_p)

    out = digit_classifier_one_hidden(x, w1, b1, w2, b2)
    out = jax.block_until_ready(out)
    assert out.shape == (B, OUT_DIM)

    # Reference in plain JAX using the same bf16-inputs / f32-accumulation
    # recipe (bf16 cast means the old 1e-4 f32 tolerance no longer applies).
    h_ref = jnp.maximum(
        jnp.dot(x.astype(jnp.bfloat16), w1.astype(jnp.bfloat16),
                preferred_element_type=jnp.float32) + b1, 0.0)
    ref = jnp.dot(h_ref.astype(jnp.bfloat16), w2.astype(jnp.bfloat16),
                  preferred_element_type=jnp.float32) + b2
    assert jnp.allclose(out, ref, atol=1e-2, rtol=1e-2)

    print("KERNEL_OK")
</pallas_src>

<mosaic_0001>
module attributes {stable_mosaic.version = 11 : i64} {
  func.func @mlp_kernel(%arg0: i32, %arg1: memref<8x784xbf16, #tpu.memory_space<vmem>>, %arg2: memref<784x392xbf16, #tpu.memory_space<vmem>>, %arg3: memref<1x392xf32, #tpu.memory_space<vmem>>, %arg4: memref<392x128xbf16, #tpu.memory_space<vmem>>, %arg5: memref<1x128xf32, #tpu.memory_space<vmem>>, %arg6: memref<8x128xf32, #tpu.memory_space<vmem>>) attributes {dimension_semantics = [#tpu.dimension_semantics<parallel>], iteration_bounds = array<i64: 1>, scalar_prefetch = 0 : i64, scratch_operands = 0 : i64, tpu.core_type = #tpu.core_type<tc>, window_params = [{transform_indices = @transform_0, window_bounds = array<i64: 8, 784>}, {pipeline_mode = #tpu.pipeline_mode<synchronous>, transform_indices = @transform_1, window_bounds = array<i64: 784, 392>}, {pipeline_mode = #tpu.pipeline_mode<synchronous>, transform_indices = @transform_2, window_bounds = array<i64: 1, 392>}, {pipeline_mode = #tpu.pipeline_mode<synchronous>, transform_indices = @transform_3, window_bounds = array<i64: 392, 128>}, {pipeline_mode = #tpu.pipeline_mode<synchronous>, transform_indices = @transform_4, window_bounds = array<i64: 1, 128>}, {transform_indices = @transform_5, window_bounds = array<i64: 8, 128>}]} {
    %c0 = arith.constant 0 : index
    %c0_0 = arith.constant 0 : index
    %0 = vector.load %arg1[%c0, %c0_0] : memref<8x784xbf16, #tpu.memory_space<vmem>>, vector<8x784xbf16>
    %c0_1 = arith.constant 0 : index
    %c0_2 = arith.constant 0 : index
    %1 = vector.load %arg2[%c0_1, %c0_2] : memref<784x392xbf16, #tpu.memory_space<vmem>>, vector<784x392xbf16>
    %cst = arith.constant dense<0.000000e+00> : vector<8x392xf32>
    %2 = tpu.matmul %0, %1, %cst {dimension_numbers = #tpu.dot_dimension_numbers<[1], [0], [0], [1], [0, 0, 1, 1], [], []>} : vector<8x784xbf16>, vector<784x392xbf16>, vector<8x392xf32> -> vector<8x392xf32>
    %c0_3 = arith.constant 0 : index
    %c0_4 = arith.constant 0 : index
    %3 = vector.load %arg3[%c0_3, %c0_4] : memref<1x392xf32, #tpu.memory_space<vmem>>, vector<1x392xf32>
    %4 = vector.broadcast %3 : vector<1x392xf32> to vector<8x392xf32>
    %5 = arith.addf %2, %4 : vector<8x392xf32>
    %cst_5 = arith.constant 0.000000e+00 : f32
    %6 = vector.broadcast %cst_5 : f32 to vector<8x392xf32>
    %7 = arith.maximumf %5, %6 : vector<8x392xf32>
    %8 = arith.truncf %7 : vector<8x392xf32> to vector<8x392xbf16>
    %c0_6 = arith.constant 0 : index
    %c0_7 = arith.constant 0 : index
    %9 = vector.load %arg4[%c0_6, %c0_7] : memref<392x128xbf16, #tpu.memory_space<vmem>>, vector<392x128xbf16>
    %cst_8 = arith.constant dense<0.000000e+00> : vector<8x128xf32>
    %10 = tpu.matmul %8, %9, %cst_8 {dimension_numbers = #tpu.dot_dimension_numbers<[1], [0], [0], [1], [0, 0, 1, 1], [], []>} : vector<8x392xbf16>, vector<392x128xbf16>, vector<8x128xf32> -> vector<8x128xf32>
    %c0_9 = arith.constant 0 : index
    %c0_10 = arith.constant 0 : index
    %11 = vector.load %arg5[%c0_9, %c0_10] : memref<1x128xf32, #tpu.memory_space<vmem>>, vector<1x128xf32>
    %12 = vector.broadcast %11 : vector<1x128xf32> to vector<8x128xf32>
    %13 = arith.addf %10, %12 : vector<8x128xf32>
    %c0_11 = arith.constant 0 : index
    %c0_12 = arith.constant 0 : index
    %14 = vector.load %arg6[%c0_11, %c0_12] : memref<8x128xf32, #tpu.memory_space<vmem>>, vector<8x128xf32>
    tpu.vector_store %arg6[%c0_11, %c0_12], %13 {strides = array<i32>} : memref<8x128xf32, #tpu.memory_space<vmem>>, vector<8x128xf32>,
    return
  }
  func.func @transform_0(%arg0: i32) -> (i32, i32) {
    %c0_i32 = arith.constant 0 : i32
    %c0_i32_0 = arith.constant 0 : i32
    return %arg0, %c0_i32 : i32, i32
  }
  func.func @transform_1(%arg0: i32) -> (i32, i32) {
    %c0_i32 = arith.constant 0 : i32
    %c0_i32_0 = arith.constant 0 : i32
    %c0_i32_1 = arith.constant 0 : i32
    return %c0_i32, %c0_i32_0 : i32, i32
  }
  func.func @transform_2(%arg0: i32) -> (i32, i32) {
    %c0_i32 = arith.constant 0 : i32
    %c0_i32_0 = arith.constant 0 : i32
    %c0_i32_1 = arith.constant 0 : i32
    return %c0_i32, %c0_i32_0 : i32, i32
  }
  func.func @transform_3(%arg0: i32) -> (i32, i32) {
    %c0_i32 = arith.constant 0 : i32
    %c0_i32_0 = arith.constant 0 : i32
    %c0_i32_1 = arith.constant 0 : i32
    return %c0_i32, %c0_i32_0 : i32, i32
  }
  func.func @transform_4(%arg0: i32) -> (i32, i32) {
    %c0_i32 = arith.constant 0 : i32
    %c0_i32_0 = arith.constant 0 : i32
    %c0_i32_1 = arith.constant 0 : i32
    return %c0_i32, %c0_i32_0 : i32, i32
  }
  func.func @transform_5(%arg0: i32) -> (i32, i32) {
    %c0_i32 = arith.constant 0 : i32
    %c0_i32_0 = arith.constant 0 : i32
    return %arg0, %c0_i32 : i32, i32
  }
}

</mosaic_0001>

<bundles_post_ra>
// kernel: tpu_custom_call.1
= control target key start
LH: loop header
LB: loop body
LE: loop exit
PB: predicated region body
PF: predicated region fallthrough
CT: control target
= control target key end

     0   :  { %s3265_s0 = inlined_call_operand.vmem [shape: bf16[8,784], index: 0, kind: input, shape index: {}]   ;;  %s3266_s1 = inlined_call_operand.vmem [shape: bf16[784,392], index: 1, kind: input, shape index: {}]   ;;  %s3267_s2 = inlined_call_operand.vmem [shape: f32[1,392], index: 2, kind: input, shape index: {}]   ;;  %s3268_s3 = inlined_call_operand.vmem [shape: bf16[392,128], index: 3, kind: input, shape index: {}]   ;;  %s3269_s4 = inlined_call_operand.vmem [shape: f32[1,128], index: 4, kind: input, shape index: {}]   ;;  %s3270_s5 = inlined_call_operand.hbm [shape: f32[8,128], index: 5, kind: output, shape index: {}]  }
   0x1   :  { %v2178_v0 = vld [vmem:[%s3266_s1 + $0x4] ss:$16 sps:$4 sm:$0xff]   ;;  %v2180_v1 = vld [vmem:[%s3266_s1 + $0xc] ss:$16 sps:$4 sm:$0xff]   ;;  %v2182_v2 = vld [vmem:[%s3266_s1] ss:$16 sps:$4 sm:$0xff]  }
   0x2   :  { %1252 = vmatprep.subr.bf16.mxu0 %v2178_v0  ;;  %v2183_v3 = vld [vmem:[%s3266_s1 + $0x8] ss:$16 sps:$4 sm:$0xff]   ;;  %1416 = vmatprep.subr.bf16.mxu1 %v2180_v1  ;;  %v2184_v4 = vld [vmem:[%s3266_s1 + $0x24] ss:$16 sps:$4 sm:$0xff]   ;;  %v2186_v5 = vld [vmem:[%s3266_s1 + $0x2c] ss:$16 sps:$4 sm:$0xff]  }
   0x3   :  { %1253 = vmatpush1.bf16.msra.mxu0 %v2182_v2  ;;  %1417 = vmatpush1.bf16.msra.mxu1 %v2183_v3  ;;  %v2188_v6 = vld [vmem:[%s3266_s1 + $0x20] ss:$16 sps:$4 sm:$0xff]   ;;  %v2189_v7 = vld [vmem:[%s3266_s1 + $0x28] ss:$16 sps:$4 sm:$0xff]   ;;  %v2190_v8 = vld [vmem:[%s3266_s1 + $0x44] ss:$16 sps:$4 sm:$0xff]  }
   0x4   :  { %1254 = vmatprep.subr.bf16.mxu0 %v2184_v4  ;;  %1418 = vmatprep.subr.bf16.mxu1 %v2186_v5  ;;  %v2192_v9 = vld [vmem:[%s3266_s1 + $0x4c] ss:$16 sps:$4 sm:$0xff]   ;;  %v2194_v10 = vld [vmem:[%s3266_s1 + $0x40] ss:$16 sps:$4 sm:$0xff]   ;;  %v2195_v11 = vld [vmem:[%s3266_s1 + $0x48] ss:$16 sps:$4 sm:$0xff]  }
   0x5   :  { %v2196_v12 = vld [vmem:[%s3266_s1 + $0x64] ss:$16 sps:$4 sm:$0xff]   ;;  %v2198_v13 = vld [vmem:[%s3266_s1 + $0x6c] ss:$16 sps:$4 sm:$0xff]   ;;  %v2200_v14 = vld [vmem:[%s3266_s1 + $0x60] ss:$16 sps:$4 sm:$0xff]  }
   0x6   :  { %v2201_v15 = vld [vmem:[%s3266_s1 + $0x68] ss:$16 sps:$4 sm:$0xff]   ;;  %v2202_v16 = vld [vmem:[%s3266_s1 + $0x84] ss:$16 sps:$4 sm:$0xff]   ;;  %v2204_v17 = vld [vmem:[%s3266_s1 + $0x8c] ss:$16 sps:$4 sm:$0xff]  }
   0x7   :  { %1255 = vmatpush1.bf16.msra.mxu0 %v2188_v6  ;;  %1419 = vmatpush1.bf16.msra.mxu1 %v2189_v7  ;;  %v2206_v18 = vld [vmem:[%s3266_s1 + $0x80] ss:$16 sps:$4 sm:$0xff]   ;;  %v2207_v19 = vld [vmem:[%s3266_s1 + $0x88] ss:$16 sps:$4 sm:$0xff]   ;;  %v2208_v20 = vld [vmem:[%s3266_s1 + $0xa4] ss:$16 sps:$4 sm:$0xff]  }
   0x8   :  { %1256 = vmatprep.subr.bf16.mxu0 %v2190_v8  ;;  %1420 = vmatprep.subr.bf16.mxu1 %v2192_v9  ;;  %v2210_v21 = vld [vmem:[%s3266_s1 + $0xac] ss:$16 sps:$4 sm:$0xff]   ;;  %v2212_v22 = vld [vmem:[%s3266_s1 + $0xa0] ss:$16 sps:$4 sm:$0xff]   ;;  %v2213_v23 = vld [vmem:[%s3266_s1 + $0xa8] ss:$16 sps:$4 sm:$0xff]  }
   0x9   :  { %v2214_v24 = vld [vmem:[%s3266_s1 + $0xc4] ss:$16 sps:$4 sm:$0xff]   ;;  %v2216_v25 = vld [vmem:[%s3266_s1 + $0xcc] ss:$16 sps:$4 sm:$0xff]   ;;  %v2218_v26 = vld [vmem:[%s3266_s1 + $0xc0] ss:$16 sps:$4 sm:$0xff]  }
   0xa   :  { %v2219_v27 = vld [vmem:[%s3266_s1 + $0xc8] ss:$16 sps:$4 sm:$0xff]   ;;  %v2220_v28 = vld [vmem:[%s3266_s1 + $0xe4] ss:$16 sps:$4 sm:$0xff]   ;;  %v2222_v29 = vld [vmem:[%s3266_s1 + $0xec] ss:$16 sps:$4 sm:$0xff]  }
   0xb   :  { %1257 = vmatpush1.bf16.msra.mxu0 %v2194_v10  ;;  %1421 = vmatpush1.bf16.msra.mxu1 %v2195_v11  ;;  %v2224_v30 = vld [vmem:[%s3266_s1 + $0xe0] ss:$16 sps:$4 sm:$0xff]   ;;  %v2225_v31 = vld [vmem:[%s3266_s1 + $0xe8] ss:$16 sps:$4 sm:$0xff]   ;;  %v2226_v32 = vld [vmem:[%s3266_s1 + $0x104] ss:$16 sps:$4 sm:$0xff]  }
   0xc   :  { %1258 = vmatprep.subr.bf16.mxu0 %v2196_v12  ;;  %1422 = vmatprep.subr.bf16.mxu1 %v2198_v13  ;;  %v2228_v33 = vld [vmem:[%s3266_s1 + $0x10c] ss:$16 sps:$4 sm:$0xff]   ;;  %v2230_v34 = vld [vmem:[%s3266_s1 + $0x100] ss:$16 sps:$4 sm:$0xff]   ;;  %v2231_v35 = vld [vmem:[%s3266_s1 + $0x108] ss:$16 sps:$4 sm:$0xff]  }
   0xd   :  { %v2232_v36 = vld [vmem:[%s3266_s1 + $0x124] ss:$16 sps:$4 sm:$0xff]   ;;  %v2234_v37 = vld [vmem:[%s3266_s1 + $0x12c] ss:$16 sps:$4 sm:$0xff]   ;;  %v2236_v38 = vld [vmem:[%s3266_s1 + $0x120] ss:$16 sps:$4 sm:$0xff]  }
   0xe   :  { %v2237_v39 = vld [vmem:[%s3266_s1 + $0x128] ss:$16 sps:$4 sm:$0xff]   ;;  %v2238_v40 = vld [vmem:[%s3266_s1 + $0x144] ss:$16 sps:$4 sm:$0xff]   ;;  %v2240_v41 = vld [vmem:[%s3266_s1 + $0x14c] ss:$16 sps:$4 sm:$0xff]  }
   0xf   :  { %1259 = vmatpush1.bf16.msra.mxu0 %v2200_v14  ;;  %1423 = vmatpush1.bf16.msra.mxu1 %v2201_v15  ;;  %v2242_v42 = vld [vmem:[%s3266_s1 + $0x140] ss:$16 sps:$4 sm:$0xff]   ;;  %v2243_v43 = vld [vmem:[%s3266_s1 + $0x148] ss:$16 sps:$4 sm:$0xff]   ;;  %v2244_v44 = vld [vmem:[%s3266_s1 + $0x164] ss:$16 sps:$4 sm:$0xff]  }
  0x10   :  { %1260 = vmatprep.subr.bf16.mxu0 %v2202_v16  ;;  %1424 = vmatprep.subr.bf16.mxu1 %v2204_v17  ;;  %v2246_v45 = vld [vmem:[%s3266_s1 + $0x16c] ss:$16 sps:$4 sm:$0xff]   ;;  %v22_v46 = vld [vmem:[%s3265_s0] sm:$0xff]  ;;  %v2249_v49 = vld [vmem:[%s3266_s1 + $0x168] ss:$16 sps:$4 sm:$0xff]  }
  0x11   :  { %v2248_v47 = vld [vmem:[%s3266_s1 + $0x160] ss:$16 sps:$4 sm:$0xff]   ;;  %v1895_v48 = vcombine.high %v22_v46, %v22_v46  ;;  %v2250_v50 = vld [vmem:[%s3266_s1 + $0x184] ss:$16 sps:$4 sm:$0xff]   ;;  %v2252_v51 = vld [vmem:[%s3266_s1 + $0x18c] ss:$16 sps:$4 sm:$0xff]   ;;  %v1894_v4 = vcombine.low %v22_v46, %v22_v46 }
  0x12   :  { %v2254_v52 = vld [vmem:[%s3266_s1 + $0x180] ss:$16 sps:$4 sm:$0xff]   ;;  %v2255_v53 = vld [vmem:[%s3266_s1 + $0x188] ss:$16 sps:$4 sm:$0xff]   ;;  %v2256_v54 = vld [vmem:[%s3266_s1 + $0x1a4] ss:$16 sps:$4 sm:$0xff]  }
  0x13   :  { %1261 = vmatpush1.bf16.msra.mxu0 %v2206_v18  ;;  %1425 = vmatpush1.bf16.msra.mxu1 %v2207_v19  ;;  %v2258_v55 = vld [vmem:[%s3266_s1 + $0x1ac] ss:$16 sps:$4 sm:$0xff]   ;;  %v2260_v56 = vld [vmem:[%s3266_s1 + $0x1a0] ss:$16 sps:$4 sm:$0xff]   ;;  %v2261_v57 = vld [vmem:[%s3266_s1 + $0x1a8] ss:$16 sps:$4 sm:$0xff]  }
  0x14   :  { %1262 = vmatprep.subr.bf16.mxu0 %v2208_v20  ;;  %1426 = vmatprep.subr.bf16.mxu1 %v2210_v21  ;;  %v2262_v58 = vld [vmem:[%s3266_s1 + $0x1c4] ss:$16 sps:$4 sm:$0xff]   ;;  %v2264_v59 = vld [vmem:[%s3266_s1 + $0x1cc] ss:$16 sps:$4 sm:$0xff]   ;;  %v2266_v60 = vld [vmem:[%s3266_s1 + $0x1c0] ss:$16 sps:$4 sm:$0xff]  }
  0x15   :  { %1284 = vmatprep.mubr.bf16.mxu0 %v1895_v48  ;;  %1448 = vmatprep.mubr.bf16.mxu1 %v1895_v48  ;;  %v2267_v61 = vld [vmem:[%s3266_s1 + $0x1c8] ss:$16 sps:$4 sm:$0xff]   ;;  %v2268_v62 = vld [vmem:[%s3266_s1 + $0x1e4] ss:$16 sps:$4 sm:$0xff]   ;;  %v2270_v63 = vld [vmem:[%s3266_s1 + $0x1ec] ss:$16 sps:$4 sm:$0xff]  }
  0x16   :  { %v2272_v0 = vld [vmem:[%s3266_s1 + $0x1e0] ss:$16 sps:$4 sm:$0xff]   ;;  %v2273_v1 = vld [vmem:[%s3266_s1 + $0x1e8] ss:$16 sps:$4 sm:$0xff]   ;;  %v2278_v2 = vld [vmem:[%s3266_s1 + $0x204] ss:$16 sps:$4 sm:$0xff]  }
  0x17   :  { %1263 = vmatpush1.bf16.msra.mxu0 %v2212_v22  ;;  %1427 = vmatpush1.bf16.msra.mxu1 %v2213_v23  ;;  %v2281_v3 = vld [vmem:[%s3266_s1 + $0x20c] ss:$16 sps:$4 sm:$0xff]   ;;  %v2276_v5 = vld [vmem:[%s3266_s1 + $0x200] ss:$16 sps:$4 sm:$0xff]   ;;  %v2279_v6 = vld [vmem:[%s3266_s1 + $0x208] ss:$16 sps:$4 sm:$0xff]  }
  0x18   :  { %1264 = vmatprep.subr.bf16.mxu0 %v2214_v24  ;;  %1428 = vmatprep.subr.bf16.mxu1 %v2216_v25  ;;  %v2284_v7 = vld [vmem:[%s3266_s1 + $0x224] ss:$16 sps:$4 sm:$0xff]   ;;  %v2287_v8 = vld [vmem:[%s3266_s1 + $0x22c] ss:$16 sps:$4 sm:$0xff]   ;;  %v2282_v9 = vld [vmem:[%s3266_s1 + $0x220] ss:$16 sps:$4 sm:$0xff]  }
  0x19   :  { %v2285_v10 = vld [vmem:[%s3266_s1 + $0x228] ss:$16 sps:$4 sm:$0xff]   ;;  %v2290_v11 = vld [vmem:[%s3266_s1 + $0x244] ss:$16 sps:$4 sm:$0xff]   ;;  %v2293_v12 = vld [vmem:[%s3266_s1 + $0x24c] ss:$16 sps:$4 sm:$0xff]  }
  0x1a   :  { %v2288_v13 = vld [vmem:[%s3266_s1 + $0x240] ss:$16 sps:$4 sm:$0xff]   ;;  %v2291_v14 = vld [vmem:[%s3266_s1 + $0x248] ss:$16 sps:$4 sm:$0xff]   ;;  %v2296_v15 = vld [vmem:[%s3266_s1 + $0x264] ss:$16 sps:$4 sm:$0xff]  }
  0x1b   :  { %1265 = vmatpush1.bf16.msra.mxu0 %v2218_v26  ;;  %1429 = vmatpush1.bf16.msra.mxu1 %v2219_v27  ;;  %v2299_v16 = vld [vmem:[%s3266_s1 + $0x26c] ss:$16 sps:$4 sm:$0xff]   ;;  %v2294_v17 = vld [vmem:[%s3266_s1 + $0x260] ss:$16 sps:$4 sm:$0xff]   ;;  %v2297_v18 = vld [vmem:[%s3266_s1 + $0x268] ss:$16 sps:$4 sm:$0xff]  }
  0x1c   :  { %1266 = vmatprep.subr.bf16.mxu0 %v2220_v28  ;;  %1430 = vmatprep.subr.bf16.mxu1 %v2222_v29  ;;  %v2302_v19 = vld [vmem:[%s3266_s1 + $0x284] ss:$16 sps:$4 sm:$0xff]   ;;  %v2305_v20 = vld [vmem:[%s3266_s1 + $0x28c] ss:$16 sps:$4 sm:$0xff]   ;;  %v2300_v21 = vld [vmem:[%s3266_s1 + $0x280] ss:$16 sps:$4 sm:$0xff]  }
  0x1d   :  { %v2303_v22 = vld [vmem:[%s3266_s1 + $0x288] ss:$16 sps:$4 sm:$0xff]   ;;  %v2308_v23 = vld [vmem:[%s3266_s1 + $0x2a4] ss:$16 sps:$4 sm:$0xff]   ;;  %v2311_v24 = vld [vmem:[%s3266_s1 + $0x2ac] ss:$16 sps:$4 sm:$0xff]  }
  0x1e   :  { %v2306_v25 = vld [vmem:[%s3266_s1 + $0x2a0] ss:$16 sps:$4 sm:$0xff]   ;;  %v2309_v26 = vld [vmem:[%s3266_s1 + $0x2a8] ss:$16 sps:$4 sm:$0xff]   ;;  %v2314_v27 = vld [vmem:[%s3266_s1 + $0x2c4] ss:$16 sps:$4 sm:$0xff]  }
  0x1f   :  { %1267 = vmatpush1.bf16.msra.mxu0 %v2224_v30  ;;  %1431 = vmatpush1.bf16.msra.mxu1 %v2225_v31  ;;  %v2317_v28 = vld [vmem:[%s3266_s1 + $0x2cc] ss:$16 sps:$4 sm:$0xff]   ;;  %v2312_v31 = vld [vmem:[%s3266_s1 + $0x2c0] ss:$16 sps:$4 sm:$0xff]   ;;  %v2339_v48 = vld [vmem:[%s3266_s1 + $0x348] ss:$16 sps:$4 sm:$0xff]  }
  0x20   :  { %1268 = vmatprep.subr.bf16.mxu0 %v2226_v32  ;;  %1432 = vmatprep.subr.bf16.mxu1 %v2228_v33  ;;  %v2836_v29 = vld [vmem:[%s3265_s0 + $0x8] sm:$0xff]  ;;  %v2320_v33 = vld [vmem:[%s3266_s1 + $0x2e4] ss:$16 sps:$4 sm:$0xff]  }
  0x21   :  { %v1897_v30 = vcombine.high %v2836_v29, %v2836_v29  ;;  %v2315_v32 = vld [vmem:[%s3266_s1 + $0x2c8] ss:$16 sps:$4 sm:$0xff]   ;;  %v2341_v46 = vld [vmem:[%s3266_s1 + $0x34c] ss:$16 sps:$4 sm:$0xff]  }
  0x23   :  { %1269 = vmatpush1.bf16.msra.mxu0 %v2230_v34  ;;  %1433 = vmatpush1.bf16.msra.mxu1 %v2231_v35  ;;  %v2323_v34 = vld [vmem:[%s3266_s1 + $0x2ec] ss:$16 sps:$4 sm:$0xff]   ;;  %v2318_v35 = vld [vmem:[%s3266_s1 + $0x2e0] ss:$16 sps:$4 sm:$0xff]  }
  0x24   :  { %1270 = vmatprep.subr.bf16.mxu0 %v2232_v36  ;;  %1434 = vmatprep.subr.bf16.mxu1 %v2234_v37  ;;  %v2321_v36 = vld [vmem:[%s3266_s1 + $0x2e8] ss:$16 sps:$4 sm:$0xff]   ;;  %v2326_v37 = vld [vmem:[%s3266_s1 + $0x304] ss:$16 sps:$4 sm:$0xff]  }
  0x27   :  { %1271 = vmatpush1.bf16.msra.mxu0 %v2236_v38  ;;  %1435 = vmatpush1.bf16.msra.mxu1 %v2237_v39  ;;  %v2329_v38 = vld [vmem:[%s3266_s1 + $0x30c] ss:$16 sps:$4 sm:$0xff]   ;;  %v2324_v39 = vld [vmem:[%s3266_s1 + $0x300] ss:$16 sps:$4 sm:$0xff]  }
  0x28   :  { %1272 = vmatprep.subr.bf16.mxu0 %v2238_v40  ;;  %1436 = vmatprep.subr.bf16.mxu1 %v2240_v41  ;;  %v2327_v40 = vld [vmem:[%s3266_s1 + $0x308] ss:$16 sps:$4 sm:$0xff]   ;;  %v2332_v41 = vld [vmem:[%s3266_s1 + $0x324] ss:$16 sps:$4 sm:$0xff]  }
  0x2b   :  { %1273 = vmatpush1.bf16.msra.mxu0 %v2242_v42  ;;  %1437 = vmatpush1.bf16.msra.mxu1 %v2243_v43  ;;  %v2335_v42 = vld [vmem:[%s3266_s1 + $0x32c] ss:$16 sps:$4 sm:$0xff]   ;;  %v2330_v43 = vld [vmem:[%s3266_s1 + $0x320] ss:$16 sps:$4 sm:$0xff]  }
  0x2c   :  { %1274 = vmatprep.subr.bf16.mxu0 %v2244_v44  ;;  %1438 = vmatprep.subr.bf16.mxu1 %v2246_v45  ;;  %v2333_v44 = vld [vmem:[%s3266_s1 + $0x328] ss:$16 sps:$4 sm:$0xff]   ;;  %v2338_v45 = vld [vmem:[%s3266_s1 + $0x344] ss:$16 sps:$4 sm:$0xff]  }
  0x2f   :  { %1275 = vmatpush1.bf16.msra.mxu0 %v2248_v47  ;;  %1439 = vmatpush1.bf16.msra.mxu1 %v2249_v49  ;;  %v2336_v47 = vld [vmem:[%s3266_s1 + $0x340] ss:$16 sps:$4 sm:$0xff]   ;;  %v2344_v49 = vld [vmem:[%s3266_s1 + $0x364] ss:$16 sps:$4 sm:$0xff]  }
  0x30   :  { %1276 = vmatprep.subr.bf16.mxu0 %v2250_v50  ;;  %1440 = vmatprep.subr.bf16.mxu1 %v2252_v51  ;;  %v2347_v50 = vld [vmem:[%s3266_s1 + $0x36c] ss:$16 sps:$4 sm:$0xff]   ;;  %v2342_v51 = vld [vmem:[%s3266_s1 + $0x360] ss:$16 sps:$4 sm:$0xff]  }
  0x33   :  { %1277 = vmatpush1.bf16.msra.mxu0 %v2254_v52  ;;  %1441 = vmatpush1.bf16.msra.mxu1 %v2255_v53  ;;  %v2345_v52 = vld [vmem:[%s3266_s1 + $0x368] ss:$16 sps:$4 sm:$0xff]   ;;  %v2350_v53 = vld [vmem:[%s3266_s1 + $0x384] ss:$16 sps:$4 sm:$0xff]  }
  0x34   :  { %1278 = vmatprep.subr.bf16.mxu0 %v2256_v54  ;;  %1442 = vmatprep.subr.bf16.mxu1 %v2258_v55  ;;  %v2353_v54 = vld [vmem:[%s3266_s1 + $0x38c] ss:$16 sps:$4 sm:$0xff]   ;;  %v2348_v55 = vld [vmem:[%s3266_s1 + $0x380] ss:$16 sps:$4 sm:$0xff]  }
  0x37   :  { %1279 = vmatpush1.bf16.msra.mxu0 %v2260_v56  ;;  %1443 = vmatpush1.bf16.msra.mxu1 %v2261_v57  ;;  %v2351_v56 = vld [vmem:[%s3266_s1 + $0x388] ss:$16 sps:$4 sm:$0xff]   ;;  %v2356_v57 = vld [vmem:[%s3266_s1 + $0x3a4] ss:$16 sps:$4 sm:$0xff]  }
  0x38   :  { %1280 = vmatprep.subr.bf16.mxu0 %v2262_v58  ;;  %1444 = vmatprep.subr.bf16.mxu1 %v2264_v59  ;;  %v2359_v58 = vld [vmem:[%s3266_s1 + $0x3ac] ss:$16 sps:$4 sm:$0xff]   ;;  %v2354_v59 = vld [vmem:[%s3266_s1 + $0x3a0] ss:$16 sps:$4 sm:$0xff]  }
  0x3b   :  { %1281 = vmatpush1.bf16.msra.mxu0 %v2266_v60  ;;  %1445 = vmatpush1.bf16.msra.mxu1 %v2267_v61  ;;  %v2357_v60 = vld [vmem:[%s3266_s1 + $0x3a8] ss:$16 sps:$4 sm:$0xff]   ;;  %v2362_v61 = vld [vmem:[%s3266_s1 + $0x3c4] ss:$16 sps:$4 sm:$0xff]  }
  0x3c   :  { %1282 = vmatprep.subr.bf16.mxu0 %v2268_v62  ;;  %1446 = vmatprep.subr.bf16.mxu1 %v2270_v63  ;;  %v2365_v62 = vld [vmem:[%s3266_s1 + $0x3cc] ss:$16 sps:$4 sm:$0xff]   ;;  %v2360_v63 = vld [vmem:[%s3266_s1 + $0x3c0] ss:$16 sps:$4 sm:$0xff]  }
  0x3f   :  { %1283 = vmatpush1.bf16.msra.mxu0 %v2272_v0  ;;  %1447 = vmatpush1.bf16.msra.mxu1 %v2273_v1  ;;  %v2363_v0 = vld [vmem:[%s3266_s1 + $0x3c8] ss:$16 sps:$4 sm:$0xff]   ;;  %v2368_v1 = vld [vmem:[%s3266_s1 + $0x3e4] ss:$16 sps:$4 sm:$0xff]  }
  0x40   :  { %1293 = vmatprep.subr.bf16.mxu0 %v2278_v2  ;;  %1457 = vmatprep.subr.bf16.mxu1 %v2281_v3  ;;  %v2371_v2 = vld [vmem:[%s3266_s1 + $0x3ec] ss:$16 sps:$4 sm:$0xff]   ;;  %v2366_v3 = vld [vmem:[%s3266_s1 + $0x3e0] ss:$16 sps:$4 sm:$0xff]  }
  0x42   :  { %1285 = vmatmul.mubr.bf16.vlgmr.msra.gmra.mrb[0].mxu0 %v1894_v4  ;;  %1449 = vmatmul.mubr.bf16.vlgmr.msra.gmra.mrb[0].mxu1 %v1894_v4  ;;  %v2369_v4 = vld [vmem:[%s3266_s1 + $0x3e8] ss:$16 sps:$4 sm:$0xff]  }
  0x43   :  { %1294 = vmatpush1.bf16.msra.mxu0 %v2276_v5  ;;  %1458 = vmatpush1.bf16.msra.mxu1 %v2279_v6  ;;  %v2376_v5 = vld [vmem:[%s3266_s1 + $0x404] ss:$16 sps:$4 sm:$0xff]   ;;  %v2379_v6 = vld [vmem:[%s3266_s1 + $0x40c] ss:$16 sps:$4 sm:$0xff]  }
  0x44   :  { %1295 = vmatprep.subr.bf16.mxu0 %v2284_v7  ;;  %1459 = vmatprep.subr.bf16.mxu1 %v2287_v8  ;;  %v1896_v7 = vcombine.low %v2836_v29, %v2836_v29  ;;  %v2374_v8 = vld [vmem:[%s3266_s1 + $0x400] ss:$16 sps:$4 sm:$0xff]   ;;  %v2409_v29 = vld [vmem:[%s3266_s1 + $0x4ac] ss:$16 sps:$4 sm:$0xff]  }
  0x45   :  { %1325 = vmatprep.mubr.bf16.mxu0 %v1897_v30  ;;  %1489 = vmatprep.mubr.bf16.mxu1 %v1897_v30  ;;  %v2404_v30 = vld [vmem:[%s3266_s1 + $0x4a0] ss:$16 sps:$4 sm:$0xff]  }
  0x47   :  { %1296 = vmatpush1.bf16.msra.mxu0 %v2282_v9  ;;  %1460 = vmatpush1.bf16.msra.mxu1 %v2285_v10  ;;  %v2377_v9 = vld [vmem:[%s3266_s1 + $0x408] ss:$16 sps:$4 sm:$0xff]   ;;  %v2382_v10 = vld [vmem:[%s3266_s1 + $0x424] ss:$16 sps:$4 sm:$0xff]  }
  0x48   :  { %1297 = vmatprep.subr.bf16.mxu0 %v2290_v11  ;;  %1461 = vmatprep.subr.bf16.mxu1 %v2293_v12  ;;  %v2974_v11 = vld [vmem:[%s3265_s0 + $0x10] sm:$0xff]  ;;  %v2385_v12 = vld [vmem:[%s3266_s1 + $0x42c] ss:$16 sps:$4 sm:$0xff]  }
  0x4b   :  { %1298 = vmatpush1.bf16.msra.mxu0 %v2288_v13  ;;  %1462 = vmatpush1.bf16.msra.mxu1 %v2291_v14  ;;  %v1899_v13 = vcombine.high %v2974_v11, %v2974_v11  ;;  %v2380_v14 = vld [vmem:[%s3266_s1 + $0x420] ss:$16 sps:$4 sm:$0xff]  }
  0x4c   :  { %1299 = vmatprep.subr.bf16.mxu0 %v2296_v15  ;;  %1463 = vmatprep.subr.bf16.mxu1 %v2299_v16  ;;  %v2383_v15 = vld [vmem:[%s3266_s1 + $0x428] ss:$16 sps:$4 sm:$0xff]   ;;  %v2388_v16 = vld [vmem:[%s3266_s1 + $0x444] ss:$16 sps:$4 sm:$0xff]  }
  0x4f   :  { %1300 = vmatpush1.bf16.msra.mxu0 %v2294_v17  ;;  %1464 = vmatpush1.bf16.msra.mxu1 %v2297_v18  ;;  %v2391_v17 = vld [vmem:[%s3266_s1 + $0x44c] ss:$16 sps:$4 sm:$0xff]   ;;  %v2386_v18 = vld [vmem:[%s3266_s1 + $0x440] ss:$16 sps:$4 sm:$0xff]  }
  0x50   :  { %1301 = vmatprep.subr.bf16.mxu0 %v2302_v19  ;;  %1465 = vmatprep.subr.bf16.mxu1 %v2305_v20  ;;  %v2389_v19 = vld [vmem:[%s3266_s1 + $0x448] ss:$16 sps:$4 sm:$0xff]   ;;  %v2394_v20 = vld [vmem:[%s3266_s1 + $0x464] ss:$16 sps:$4 sm:$0xff]  }
  0x53   :  { %1302 = vmatpush1.bf16.msra.mxu0 %v2300_v21  ;;  %1466 = vmatpush1.bf16.msra.mxu1 %v2303_v22  ;;  %v2397_v21 = vld [vmem:[%s3266_s1 + $0x46c] ss:$16 sps:$4 sm:$0xff]   ;;  %v2392_v22 = vld [vmem:[%s3266_s1 + $0x460] ss:$16 sps:$4 sm:$0xff]  }
  0x54   :  { %1303 = vmatprep.subr.bf16.mxu0 %v2308_v23  ;;  %1467 = vmatprep.subr.bf16.mxu1 %v2311_v24  ;;  %v2395_v23 = vld [vmem:[%s3266_s1 + $0x468] ss:$16 sps:$4 sm:$0xff]   ;;  %v2400_v24 = vld [vmem:[%s3266_s1 + $0x484] ss:$16 sps:$4 sm:$0xff]  }
  0x57   :  { %1304 = vmatpush1.bf16.msra.mxu0 %v2306_v25  ;;  %1468 = vmatpush1.bf16.msra.mxu1 %v2309_v26  ;;  %v2403_v25 = vld [vmem:[%s3266_s1 + $0x48c] ss:$16 sps:$4 sm:$0xff]   ;;  %v2398_v26 = vld [vmem:[%s3266_s1 + $0x480] ss:$16 sps:$4 sm:$0xff]  }
  0x58   :  { %1305 = vmatprep.subr.bf16.mxu0 %v2314_v27  ;;  %1469 = vmatprep.subr.bf16.mxu1 %v2317_v28  ;;  %v2401_v27 = vld [vmem:[%s3266_s1 + $0x488] ss:$16 sps:$4 sm:$0xff]   ;;  %v2406_v28 = vld [vmem:[%s3266_s1 + $0x4a4] ss:$16 sps:$4 sm:$0xff]  }
  0x5b   :  { %1306 = vmatpush1.bf16.msra.mxu0 %v2312_v31  ;;  %1470 = vmatpush1.bf16.msra.mxu1 %v2315_v32  ;;  %v2407_v31 = vld [vmem:[%s3266_s1 + $0x4a8] ss:$16 sps:$4 sm:$0xff]   ;;  %v2412_v32 = vld [vmem:[%s3266_s1 + $0x4c4] ss:$16 sps:$4 sm:$0xff]  }
  0x5c   :  { %1307 = vmatprep.subr.bf16.mxu0 %v2320_v33  ;;  %1471 = vmatprep.subr.bf16.mxu1 %v2323_v34  ;;  %v2415_v33 = vld [vmem:[%s3266_s1 + $0x4cc] ss:$16 sps:$4 sm:$0xff]   ;;  %v2410_v34 = vld [vmem:[%s3266_s1 + $0x4c0] ss:$16 sps:$4 sm:$0xff]  }
  0x5f   :  { %1308 = vmatpush1.bf16.msra.mxu0 %v2318_v35  ;;  %1472 = vmatpush1.bf16.msra.mxu1 %v2321_v36  ;;  %v2413_v35 = vld [vmem:[%s3266_s1 + $0x4c8] ss:$16 sps:$4 sm:$0xff]   ;;  %v2418_v36 = vld [vmem:[%s3266_s1 + $0x4e4] ss:$16 sps:$4 sm:$0xff]  }
  0x60   :  { %1309 = vmatprep.subr.bf16.mxu0 %v2326_v37  ;;  %1473 = vmatprep.subr.bf16.mxu1 %v2329_v38  ;;  %v2421_v37 = vld [vmem:[%s3266_s1 + $0x4ec] ss:$16 sps:$4 sm:$0xff]  }
  0x63   :  { %1310 = vmatpush1.bf16.msra.mxu0 %v2324_v39  ;;  %1474 = vmatpush1.bf16.msra.mxu1 %v2327_v40 }
  0x64   :  { %1311 = vmatprep.subr.bf16.mxu0 %v2332_v41  ;;  %1475 = vmatprep.subr.bf16.mxu1 %v2335_v42 }
  0x67   :  { %1312 = vmatpush1.bf16.msra.mxu0 %v2330_v43  ;;  %1476 = vmatpush1.bf16.msra.mxu1 %v2333_v44 }
  0x68   :  { %1313 = vmatprep.subr.bf16.mxu0 %v2338_v45  ;;  %1477 = vmatprep.subr.bf16.mxu1 %v2341_v46 }
  0x6b   :  { %1314 = vmatpush1.bf16.msra.mxu0 %v2336_v47  ;;  %1478 = vmatpush1.bf16.msra.mxu1 %v2339_v48 }
  0x6c   :  { %1315 = vmatprep.subr.bf16.mxu0 %v2344_v49  ;;  %1479 = vmatprep.subr.bf16.mxu1 %v2347_v50 }
  0x6f   :  { %1316 = vmatpush1.bf16.msra.mxu0 %v2342_v51  ;;  %1480 = vmatpush1.bf16.msra.mxu1 %v2345_v52 }
  0x70   :  { %1317 = vmatprep.subr.bf16.mxu0 %v2350_v53  ;;  %1481 = vmatprep.subr.bf16.mxu1 %v2353_v54 }
  0x73   :  { %1318 = vmatpush1.bf16.msra.mxu0 %v2348_v55  ;;  %1482 = vmatpush1.bf16.msra.mxu1 %v2351_v56 }
  0x74   :  { %1319 = vmatprep.subr.bf16.mxu0 %v2356_v57  ;;  %1483 = vmatprep.subr.bf16.mxu1 %v2359_v58 }
  0x77   :  { %1320 = vmatpush1.bf16.msra.mxu0 %v2354_v59  ;;  %1484 = vmatpush1.bf16.msra.mxu1 %v2357_v60 }
  0x78   :  { %1321 = vmatprep.subr.bf16.mxu0 %v2362_v61  ;;  %1485 = vmatprep.subr.bf16.mxu1 %v2365_v62 }
  0x7b   :  { %1322 = vmatpush1.bf16.msra.mxu0 %v2360_v63  ;;  %1486 = vmatpush1.bf16.msra.mxu1 %v2363_v0 }
  0x7c   :  { %1323 = vmatprep.subr.bf16.mxu0 %v2368_v1  ;;  %1487 = vmatprep.subr.bf16.mxu1 %v2371_v2 }
  0x7f   :  { %1324 = vmatpush1.bf16.msra.mxu0 %v2366_v3  ;;  %1488 = vmatpush1.bf16.msra.mxu1 %v2369_v4 }
  0x80   :  { %1334 = vmatprep.subr.bf16.mxu0 %v2376_v5  ;;  %1498 = vmatprep.subr.bf16.mxu1 %v2379_v6 }
  0x82   :  { %1326 = vmatmul.mubr.bf16.vlgmr.msra.gmra.mrb[0].mxu0 %v1896_v7  ;;  %1490 = vmatmul.mubr.bf16.vlgmr.msra.gmra.mrb[0].mxu1 %v1896_v7 }
  0x83   :  { %1335 = vmatpush1.bf16.msra.mxu0 %v2374_v8  ;;  %1499 = vmatpush1.bf16.msra.mxu1 %v2377_v9 }
  0x84   :  { %1336 = vmatprep.subr.bf16.mxu0 %v2382_v10  ;;  %1500 = vmatprep.subr.bf16.mxu1 %v2385_v12 }
  0x85   :  { %1366 = vmatprep.mubr.bf16.mxu0 %v1899_v13  ;;  %1530 = vmatprep.mubr.bf16.mxu1 %v1899_v13 }
  0x87   :  { %1337 = vmatpush1.bf16.msra.mxu0 %v2380_v14  ;;  %1501 = vmatpush1.bf16.msra.mxu1 %v2383_v15 }
  0x88   :  { %1338 = vmatprep.subr.bf16.mxu0 %v2388_v16  ;;  %1502 = vmatprep.subr.bf16.mxu1 %v2391_v17 }
  0x8b   :  { %1339 = vmatpush1.bf16.msra.mxu0 %v2386_v18  ;;  %1503 = vmatpush1.bf16.msra.mxu1 %v2389_v19 }
  0x8c   :  { %1340 = vmatprep.subr.bf16.mxu0 %v2394_v20  ;;  %1504 = vmatprep.subr.bf16.mxu1 %v2397_v21 }
  0x8f   :  { %1341 = vmatpush1.bf16.msra.mxu0 %v2392_v22  ;;  %1505 = vmatpush1.bf16.msra.mxu1 %v2395_v23 }
  0x90   :  { %1342 = vmatprep.subr.bf16.mxu0 %v2400_v24  ;;  %1506 = vmatprep.subr.bf16.mxu1 %v2403_v25 }
  0x93   :  { %1343 = vmatpush1.bf16.msra.mxu0 %v2398_v26  ;;  %1507 = vmatpush1.bf16.msra.mxu1 %v2401_v27 }
  0x94   :  { %1344 = vmatprep.subr.bf16.mxu0 %v2406_v28  ;;  %1508 = vmatprep.subr.bf16.mxu1 %v2409_v29 }
  0x97   :  { %1345 = vmatpush1.bf16.msra.mxu0 %v2404_v30  ;;  %1509 = vmatpush1.bf16.msra.mxu1 %v2407_v31 }
  0x98   :  { %1346 = vmatprep.subr.bf16.mxu0 %v2412_v32  ;;  %1510 = vmatprep.subr.bf16.mxu1 %v2415_v33 }
  0x99   :  { %10 = vsyncpa [#allocation3], 0  ;;  %v2416_v38 = vld [vmem:[%s3266_s1 + $0x4e0] ss:$16 sps:$4 sm:$0xff]   ;;  %v2419_v39 = vld [vmem:[%s3266_s1 + $0x4e8] ss:$16 sps:$4 sm:$0xff]   ;;  %v1898_v10 = vcombine.low %v2974_v11, %v2974_v11 }
  0x9a   :  { %v2424_v40 = vld [vmem:[%s3266_s1 + $0x504] ss:$16 sps:$4 sm:$0xff]   ;;  %v2427_v41 = vld [vmem:[%s3266_s1 + $0x50c] ss:$16 sps:$4 sm:$0xff]   ;;  %v2422_v42 = vld [vmem:[%s3266_s1 + $0x500] ss:$16 sps:$4 sm:$0xff]  }
  0x9b   :  { %1347 = vmatpush1.bf16.msra.mxu0 %v2410_v34  ;;  %1511 = vmatpush1.bf16.msra.mxu1 %v2413_v35  ;;  %v2425_v43 = vld [vmem:[%s3266_s1 + $0x508] ss:$16 sps:$4 sm:$0xff]   ;;  %v2430_v44 = vld [vmem:[%s3266_s1 + $0x524] ss:$16 sps:$4 sm:$0xff]   ;;  %v2433_v45 = vld [vmem:[%s3266_s1 + $0x52c] ss:$16 sps:$4 sm:$0xff]  }
  0x9c   :  { %1348 = vmatprep.subr.bf16.mxu0 %v2418_v36  ;;  %1512 = vmatprep.subr.bf16.mxu1 %v2421_v37  ;;  %v2428_v46 = vld [vmem:[%s3266_s1 + $0x520] ss:$16 sps:$4 sm:$0xff]   ;;  %v2431_v47 = vld [vmem:[%s3266_s1 + $0x528] ss:$16 sps:$4 sm:$0xff]   ;;  %v2436_v48 = vld [vmem:[%s3266_s1 + $0x544] ss:$16 sps:$4 sm:$0xff]  }
  0x9d   :  { %v2439_v49 = vld [vmem:[%s3266_s1 + $0x54c] ss:$16 sps:$4 sm:$0xff]   ;;  %v2434_v50 = vld [vmem:[%s3266_s1 + $0x540] ss:$16 sps:$4 sm:$0xff]   ;;  %v2437_v51 = vld [vmem:[%s3266_s1 + $0x548] ss:$16 sps:$4 sm:$0xff]  }
  0x9e   :  { %v2442_v52 = vld [vmem:[%s3266_s1 + $0x564] ss:$16 sps:$4 sm:$0xff]   ;;  %v2445_v53 = vld [vmem:[%s3266_s1 + $0x56c] ss:$16 sps:$4 sm:$0xff]   ;;  %v2440_v54 = vld [vmem:[%s3266_s1 + $0x560] ss:$16 sps:$4 sm:$0xff]  }
  0x9f   :  { %1349 = vmatpush1.bf16.msra.mxu0 %v2416_v38  ;;  %1513 = vmatpush1.bf16.msra.mxu1 %v2419_v39  ;;  %v2443_v55 = vld [vmem:[%s3266_s1 + $0x568] ss:$16 sps:$4 sm:$0xff]   ;;  %v2448_v56 = vld [vmem:[%s3266_s1 + $0x584] ss:$16 sps:$4 sm:$0xff]   ;;  %v2451_v57 = vld [vmem:[%s3266_s1 + $0x58c] ss:$16 sps:$4 sm:$0xff]  }
  0xa0   :  { %1350 = vmatprep.subr.bf16.mxu0 %v2424_v40  ;;  %1514 = vmatprep.subr.bf16.mxu1 %v2427_v41  ;;  %v2446_v58 = vld [vmem:[%s3266_s1 + $0x580] ss:$16 sps:$4 sm:$0xff]   ;;  %v2449_v59 = vld [vmem:[%s3266_s1 + $0x588] ss:$16 sps:$4 sm:$0xff]   ;;  %v2454_v60 = vld [vmem:[%s3266_s1 + $0x5a4] ss:$16 sps:$4 sm:$0xff]   ;;  %v224_v41 = vlaneseq }
  0xa1   :  { %v2457_v61 = vld [vmem:[%s3266_s1 + $0x5ac] ss:$16 sps:$4 sm:$0xff]   ;;  %v2452_v62 = vld [vmem:[%s3266_s1 + $0x5a0] ss:$16 sps:$4 sm:$0xff]   ;;  %v2455_v63 = vld [vmem:[%s3266_s1 + $0x5a8] ss:$16 sps:$4 sm:$0xff]  }
  0xa2   :  { %v2460_v0 = vld [vmem:[%s3266_s1 + $0x5c4] ss:$16 sps:$4 sm:$0xff]   ;;  %v2463_v1 = vld [vmem:[%s3266_s1 + $0x5cc] ss:$16 sps:$4 sm:$0xff]   ;;  %v2458_v2 = vld [vmem:[%s3266_s1 + $0x5c0] ss:$16 sps:$4 sm:$0xff]  }
  0xa3   :  { %1351 = vmatpush1.bf16.msra.mxu0 %v2422_v42  ;;  %1515 = vmatpush1.bf16.msra.mxu1 %v2425_v43  ;;  %v2461_v3 = vld [vmem:[%s3266_s1 + $0x5c8] ss:$16 sps:$4 sm:$0xff]   ;;  %v2466_v4 = vld [vmem:[%s3266_s1 + $0x5e4] ss:$16 sps:$4 sm:$0xff]   ;;  %v2469_v5 = vld [vmem:[%s3266_s1 + $0x5ec] ss:$16 sps:$4 sm:$0xff]  }
  0xa4   :  { %1352 = vmatprep.subr.bf16.mxu0 %v2430_v44  ;;  %1516 = vmatprep.subr.bf16.mxu1 %v2433_v45  ;;  %v2464_v6 = vld [vmem:[%s3266_s1 + $0x5e0] ss:$16 sps:$4 sm:$0xff]   ;;  %v2467_v7 = vld [vmem:[%s3266_s1 + $0x5e8] ss:$16 sps:$4 sm:$0xff]   ;;  %v2474_v8 = vld [vmem:[%s3266_s1 + $0x604] ss:$16 sps:$4 sm:$0xff]  }
  0xa5   :  { %v2477_v9 = vld [vmem:[%s3266_s1 + $0x60c] ss:$16 sps:$4 sm:$0xff]   ;;  %v2472_v12 = vld [vmem:[%s3266_s1 + $0x600] ss:$16 sps:$4 sm:$0xff]   ;;  %v2475_v13 = vld [vmem:[%s3266_s1 + $0x608] ss:$16 sps:$4 sm:$0xff]  }
  0xa6   :  { %v2480_v14 = vld [vmem:[%s3268_s3 + $0x40] sm:$0xff]   ;;  %v2528_v11 = vmov 0   ;;  %v2478_v15 = vld [vmem:[%s3265_s0 + $0x18] ss:$0 sps:$4 sm:$0xff]   ;;  %vm1248_vm0 = vcmask 130048   ;;  %v2483_v18 = vld [vmem:[%s3268_s3 + $0x48] sm:$0xff]  }
  0xa7   :  { %1353 = vmatpush1.bf16.msra.mxu0 %v2428_v46  ;;  %1517 = vmatpush1.bf16.msra.mxu1 %v2431_v47  ;;  %v2479_v16 = vld [vmem:[%s3268_s3 + $0x80] sm:$0xff]   ;;  %v2482_v19 = vld [vmem:[%s3268_s3 + $0x88] sm:$0xff]   ;;  %v2486_v21 = vld [vmem:[%s3268_s3 + $0x50] sm:$0xff]   ;;  %vm1795_vm1 = vcmask 1043456   ;;  %v225_v42 = vshrl.u32 %v224_v41, 7  ;;  %vm1791_vm2 = vcmask 64512  }
  0xa8   :  { %1354 = vmatprep.subr.bf16.mxu0 %v2436_v48  ;;  %1518 = vmatprep.subr.bf16.mxu1 %v2439_v49  ;;  %v2481_v17 = vld [vmem:[%s3268_s3] sm:$0xff]   ;;  %v2484_v20 = vld [vmem:[%s3268_s3 + $0x8] sm:$0xff]   ;;  %v2485_v22 = vld [vmem:[%s3268_s3 + $0x90] sm:$0xff]   ;;  %s2529_s16 = smov [#allocation2]  }
  0xa9   :  { %v2487_v23 = vld [vmem:[%s3268_s3 + $0x10] sm:$0xff]   ;;  %v2489_v24 = vld [vmem:[%s3268_s3 + $0x58] sm:$0xff]   ;;  %v2492_v27 = vld [vmem:[%s3268_s3 + $0x60] sm:$0xff]   ;;  %v226_v43 = vsub.s32 0, %v225_v42  ;;  %v234_v44 = vsub.s32 2, %v225_v42  ;;  %v230_v46 = vsub.s32 1, %v225_v42 }
  0xaa   :  { %v2488_v25 = vld [vmem:[%s3268_s3 + $0x98] sm:$0xff]   ;;  %v2491_v28 = vld [vmem:[%s3268_s3 + $0xa0] sm:$0xff]   ;;  %v2495_v30 = vld [vmem:[%s3268_s3 + $0x68] sm:$0xff]   ;;  %v238_v47 = vsub.s32 3, %v225_v42  ;;  %s1886_s17 = sshll.u32 %s2529_s16, 4  ;;  %s1887_s17 = int_to_ptr.vmem [resolvable:$true] %s1886_s17 }
  0xab   :  { %1355 = vmatpush1.bf16.msra.mxu0 %v2434_v50  ;;  %1519 = vmatpush1.bf16.msra.mxu1 %v2437_v51  ;;  %v2490_v26 = vld [vmem:[%s3268_s3 + $0x18] sm:$0xff]   ;;  %v2493_v29 = vld [vmem:[%s3268_s3 + $0x20] sm:$0xff]   ;;  %v2494_v31 = vld [vmem:[%s3268_s3 + $0xa8] sm:$0xff]   ;;  %s2504_s18 = scalar_lea.vmem %s1887_s17, 128  ;;  %p2509_p1 = scmp.lt.s32.totalorder %s1887_s17, %s1887_s17 }
  0xac   :  { %1356 = vmatprep.subr.bf16.mxu0 %v2442_v52  ;;  %1520 = vmatprep.subr.bf16.mxu1 %v2445_v53  ;;  %v2496_v32 = vld [vmem:[%s3268_s3 + $0x28] sm:$0xff]   ;;  %v2497_v33 = vld [vmem:[%s3268_s3 + $0xb0] sm:$0xff]   ;;  %v2500_v36 = vld [vmem:[%s3268_s3 + $0xb8] sm:$0xff]   ;;  %p2505_p0 = scmp.ne.s32.totalorder %s1887_s17, %s2504_s18  ;;  %p2510_p2 = scmp.lt.s32.totalorder %s2504_s18, %s2504_s18 }
  0xad   :  { %v2498_v34 = vld [vmem:[%s3268_s3 + $0x70] sm:$0xff]   ;;  %v2501_v37 = vld [vmem:[%s3268_s3 + $0x78] sm:$0xff]   ;;  %v2503_v38 = vld [vmem:[%s3268_s3 + $0xc0] ss:$0 sps:$4 sm:$0xff]  }
  0xae   :  { %v2499_v35 = vld [vmem:[%s3268_s3 + $0x30] sm:$0xff]   ;;  %v2502_v39 = vld [vmem:[%s3268_s3 + $0x38] sm:$0xff]   ;;  %v1797_v40 = vsel %vm1795_vm1, %v2503_v38, 0  ;;  %v222_v45 = vld [vmem:[%s3267_s2] sm:$0xf]  ;;  %p2511_p3 = por %p2510_p2, %p2509_p1 }
  0xaf   :  { %1357 = vmatpush1.bf16.msra.mxu0 %v2440_v54  ;;  %1521 = vmatpush1.bf16.msra.mxu1 %v2443_v55  ;;  %v227_v48 = vrot.slane %v222_v45, %v226_v43  ;;  %v235_v49 = vrot.slane %v222_v45, %v234_v44  ;;  %v231_v50 = vrot.slane %v222_v45, %v230_v46 }
  0xb0   :  { %1358 = vmatprep.subr.bf16.mxu0 %v2448_v56  ;;  %1522 = vmatprep.subr.bf16.mxu1 %v2451_v57  ;;  %v239_v51 = vrot.slane %v222_v45, %v238_v47  ;;  %p2512_p4 = pnand %p2511_p3, %p2505_p0 }
  0xb3   :  { %1359 = vmatpush1.bf16.msra.mxu0 %v2446_v58  ;;  %1523 = vmatpush1.bf16.msra.mxu1 %v2449_v59 }
  0xb4   :  { %1360 = vmatprep.subr.bf16.mxu0 %v2454_v60  ;;  %1524 = vmatprep.subr.bf16.mxu1 %v2457_v61 }
  0xb7   :  { %1361 = vmatpush1.bf16.msra.mxu0 %v2452_v62  ;;  %1525 = vmatpush1.bf16.msra.mxu1 %v2455_v63 }
  0xb8   :  { %1362 = vmatprep.subr.bf16.mxu0 %v2460_v0  ;;  %1526 = vmatprep.subr.bf16.mxu1 %v2463_v1 }
  0xbb   :  { %1363 = vmatpush1.bf16.msra.mxu0 %v2458_v2  ;;  %1527 = vmatpush1.bf16.msra.mxu1 %v2461_v3 }
  0xbc   :  { %1364 = vmatprep.subr.bf16.mxu0 %v2466_v4  ;;  %1528 = vmatprep.subr.bf16.mxu1 %v2469_v5 }
  0xbf   :  { %1365 = vmatpush1.bf16.msra.mxu0 %v2464_v6  ;;  %1529 = vmatpush1.bf16.msra.mxu1 %v2467_v7 }
  0xc0   :  { %1375 = vmatprep.subr.bf16.mxu0 %v2474_v8  ;;  %1539 = vmatprep.subr.bf16.mxu1 %v2477_v9 }
  0xc2   :  { %1367 = vmatmul.mubr.bf16.vlgmr.msra.gmra.mrb[0].mxu0 %v1898_v10  ;;  %1531 = vmatmul.mubr.bf16.vlgmr.msra.gmra.mrb[0].mxu1 %v1898_v10  ;;  %v2099_v10 = vld [vmem:[%s3269_s4] ss:$0 sm:$0xff] }
  0xc3   :  { %1376 = vmatpush1.bf16.msra.mxu0 %v2472_v12  ;;  %1540 = vmatpush1.bf16.msra.mxu1 %v2475_v13 }
  0xc4   :  { %1407 = vmatprep.mubr.bf16.mxu0 %v2528_v11  ;;  %1571 = vmatprep.mubr.bf16.mxu1 %v2528_v11 }
  0xc5   :  { %1839 = vmatprep.subr.bf16.mxu1 %v2528_v11  ;;  %2126 = vmatprep.subr.bf16.mxu0 %v2480_v14 }
  0xce   :  { %2097 = vmatmul.mubr.msk.bf16.vlgmr.msra.gmra.mrb[0].mxu0 %vm1248_vm0, %v2478_v15  ;;  %2098 = vmatmul.mubr.msk.bf16.vlgmr.msra.gmra.mrb[0].mxu1 %vm1248_vm0, %v2478_v15 }
  0xcf   :  { %1840 = vmatpush1.bf16.msra.mxu1 %v2479_v16  ;;  %2127 = vmatpush3.bf16.msra.mxu0 %v2481_v17 }
  0xd0   :  { %1841 = vmatprep.subr.bf16.mxu1 %v2528_v11  ;;  %2128 = vmatprep.subr.bf16.mxu0 %v2483_v18 }
  0xd3   :  { %1842 = vmatpush1.bf16.msra.mxu1 %v2482_v19  ;;  %2129 = vmatpush3.bf16.msra.mxu0 %v2484_v20 }
  0xd4   :  { %1843 = vmatprep.subr.bf16.mxu1 %v2528_v11  ;;  %2130 = vmatprep.subr.bf16.mxu0 %v2486_v21 }
  0xd7   :  { %1844 = vmatpush1.bf16.msra.mxu1 %v2485_v22  ;;  %2131 = vmatpush3.bf16.msra.mxu0 %v2487_v23 }
  0xd8   :  { %1845 = vmatprep.subr.bf16.mxu1 %v2528_v11  ;;  %2132 = vmatprep.subr.bf16.mxu0 %v2489_v24 }
  0xdb   :  { %1846 = vmatpush1.bf16.msra.mxu1 %v2488_v25  ;;  %2133 = vmatpush3.bf16.msra.mxu0 %v2490_v26 }
  0xdc   :  { %1847 = vmatprep.subr.bf16.mxu1 %v2528_v11  ;;  %2134 = vmatprep.subr.bf16.mxu0 %v2492_v27 }
  0xdf   :  { %1848 = vmatpush1.bf16.msra.mxu1 %v2491_v28  ;;  %2135 = vmatpush3.bf16.msra.mxu0 %v2493_v29 }
  0xe0   :  { %1849 = vmatprep.subr.bf16.mxu1 %v2528_v11  ;;  %2136 = vmatprep.subr.bf16.mxu0 %v2495_v30 }
  0xe3   :  { %1850 = vmatpush1.bf16.msra.mxu1 %v2494_v31  ;;  %2137 = vmatpush3.bf16.msra.mxu0 %v2496_v32 }
  0xe4   :  { %1851 = vmatprep.subr.bf16.mxu1 %v2528_v11  ;;  %2138 = vmatprep.subr.bf16.mxu0 %v2498_v34 }
  0xe7   :  { %1852 = vmatpush1.bf16.msra.mxu1 %v2497_v33  ;;  %2139 = vmatpush3.bf16.msra.mxu0 %v2499_v35 }
  0xe8   :  { %1853 = vmatprep.subr.bf16.mxu1 %v2528_v11  ;;  %2140 = vmatprep.subr.bf16.mxu0 %v2501_v37 }
  0xeb   :  { %1854 = vmatpush1.bf16.msra.mxu1 %v2500_v36  ;;  %2141 = vmatpush3.bf16.msra.mxu0 %v2502_v39 }
  0xec   :  { %1855 = vmatprep.subr.bf16.mxu1 %v2528_v11 }
  0xef   :  { %1856 = vmatpush1.bf16.msra.mxu1 %v1797_v40 }
 0x1a1   :  { %v1409_v52 = vpop.f32.mrb[0].mxu0  ;;  %v1573_v53 = vpop.f32.mrb[0].mxu1 }
 0x1a2   :  { %v2148_v54 = vadd.f32 %v1409_v52, %v227_v48  ;;  %v2150_v55 = vadd.f32 %v1573_v53, %v235_v49  ;;  %v1411_v56 = vpop.f32.mrb[1].mxu0  ;;  %v1575_v57 = vpop.f32.mrb[1].mxu1 }
 0x1a3   :  { %v2149_v58 = vadd.f32 %v1411_v56, %v231_v50  ;;  %v2151_v59 = vadd.f32 %v1575_v57, %v239_v51  ;;  %v1413_v60 = vpop.f32.mrb[2].mxu0  ;;  %v1577_v61 = vpop.f32.mrb[2].mxu1 }
 0x1a4   :  { %v1580_v62 = vmax.f32 %v2148_v54, 0.0  ;;  %v1582_v63 = vmax.f32 %v2150_v55, 0.0  ;;  %v1414_v0 = vpop.f32.mrb[3].mxu0  ;;  %v1578_v1 = vpop.f32.mrb[3].mxu1 }
 0x1a5   :  { %v1581_v2 = vmax.f32 %v2149_v58, 0.0  ;;  %v1583_v3 = vmax.f32 %v2151_v59, 0.0 }
 0x1a6   :  { %v1584_v6 = vpack.c.bf16 %v1580_v62, %v1580_v62  ;;  %v1586_v7 = vpack.c.bf16 %v1582_v63, %v1582_v63 }
 0x1a7   :  { %v1585_v4 = vpack.c.bf16 %v1581_v2, %v1581_v2  ;;  %v1587_v5 = vpack.c.bf16 %v1583_v3, %v1583_v3 }
 0x1a9   :  { %1831 = vmatprep.mubr.bf16.mxu0 %v1585_v4  ;;  %2125 = vmatprep.mubr.msk.bf16.mxu1 %vm1791_vm2, %v1587_v5 }
 0x1aa   :  { %1832 = vmatmul.mubr.bf16.vlgmr.msra.gmra.mrb[4].mxu0 %v1584_v6  ;;  %1872 = vmatmul.mubr.bf16.vlgmr.msra.gmra.mrb[4].mxu1 %v1586_v7 }
 0x27d   :  { %v2142_v8 = vpop.f32.mrb[4].mxu0  ;;  %v1873_v9 = vpop.f32.mrb[4].mxu1 }
 0x27e   :  { %v2143_v12 = vpop.f32.mrb[5].mxu0  ;;  %v1875_v13 = vpop.f32.mrb[5].mxu1 }
 0x27f   :  { %v2144_v14 = vadd.f32 %v2143_v12, %v2142_v8  ;;  %v2145_v11 = vpop.f32.mrb[6].mxu0  ;;  %v1876_v15 = vpop.f32.mrb[6].mxu1 }
 0x280   :  { %v2146_v16 = vpop.f32.mrb[7].mxu0  ;;  %v1877_v17 = vpop.f32.mrb[7].mxu1 }
 0x281   :  { %v1834_v18 = vadd.f32 %v2144_v14, %v2099_v10 }
 0x283   :  { %v1874_v19 = vadd.f32 %v1873_v9, %v1834_v18 }
 0x285   :  { %1879 = vst [vmem:[#allocation2] sm:$0xff] %v1874_v19 }
 0x286   :  { %2515 = shalt.err (!%p2512_p4)
}
 0x287   :  { %s2516_s1 = scalar_lea.hbm %s3270_s5, 128 }
 0x288   :  { %p2517_p5 = scmp.ne.s32.totalorder %s3270_s5, %s2516_s1  ;;  %p2520_p6 = scmp.lt.u32.totalorder %s2516_s1, %s3270_s5 }
 0x28a   :  { %p2522_p7 = pnand %p2520_p6, %p2517_p5 }
 0x28c   :  { %2525 = shalt.err (!%p2522_p7)
}
 0x28d   :  { %1889 = dma.vmem_to_hbm [thread:$0]  %s1887_s17, 128, %s3270_s5, [#allocation3]  }
 0x28e   :  { %2526 = dma.done.wait [#allocation3], 128  }
 0x28f   :  { %2527 = vsyncadd [#allocation3], 4294967168 }
 0x290   :  { %1893 = vsyncpa [#allocation3], 1 }

</bundles_post_ra>
